<compile_context>
chip_gen: v5e
topology: v5e:2x2
jax: 0.10.0
libtpu: 0.0.40
codegen_flags: <defaults>
</compile_context>

<pallas_src>
import math

import jax
import jax.numpy as jnp
from jax.experimental import pallas as pl
from jax.experimental.pallas import tpu as pltpu


def _round_up(x, m):
    return ((x + m - 1) // m) * m


def _comp_classifier_kernel(x_ref, wf_ref, b1_ref, w2_ref, b2_ref, out_ref):
    """Per batch-tile forward pass.

    x_ref  : (TB, 784)         bf16  flattened image tile (streamed, pipelined)
    wf_ref : (784, Hid_pad)    bf16  fused composition+fc1 weight (VMEM-resident)
    b1_ref : (1, Hid_pad)      f32
    w2_ref : (Hid_pad, N_pad)  f32
    b2_ref : (1, N_pad)        f32
    out_ref: (TB, N_pad)       f32   lane-dense output (sliced to 10 cols in the wrapper)
    """
    h = jnp.dot(x_ref[...], wf_ref[...], preferred_element_type=jnp.float32)
    h = jnp.maximum(h + b1_ref[...], 0.0)
    out_ref[...] = jnp.dot(h, w2_ref[...], preferred_element_type=jnp.float32) + b2_ref[...]


def _build_fused_weight(theta_x, theta_y, w1, *, img_h, img_w, hid_pad):
    """Parameter-only precompute: W_fused = [cos(theta) | -sin(theta)] @ w1_perm.

    PyTorch interleaves (cos, -sin) pairs along the embedding dim; we order the columns
    of M as [all cos | all -sin] and permute the fc1 rows to match, which is exactly
    equivalent.  Columns are zero-padded to hid_pad (a no-op for hidden=128).
    """
    D2 = theta_x.shape[0]
    D = 2 * D2

    ii, jj = jnp.meshgrid(jnp.arange(img_h, dtype=jnp.float32),
                          jnp.arange(img_w, dtype=jnp.float32), indexing="ij")
    i_g = ii.reshape(-1, 1)                                         # (HW, 1)
    j_g = jj.reshape(-1, 1)
    theta = i_g * theta_x[None, :] + j_g * theta_y[None, :]         # (HW, D2)
    M = jnp.concatenate([jnp.cos(theta), -jnp.sin(theta)], axis=1)  # (HW, D)

    perm = jnp.concatenate([jnp.arange(0, D, 2), jnp.arange(1, D, 2)])
    w1_perm = w1[perm]                                              # (D, 128), cos rows first

    w_fused = jnp.dot(M, w1_perm.astype(jnp.float32),
                      precision=jax.lax.Precision.HIGHEST)          # (HW, 128)
    n_hidden = w_fused.shape[1]
    if hid_pad != n_hidden:
        w_fused = jnp.pad(w_fused, ((0, 0), (0, hid_pad - n_hidden)))
    return w_fused.astype(jnp.float32)


def composition_classifier_forward(x_nchw, params, *, embedding_dim=None, block_batch=512):
    """Wrapper: padding / fused-weight construction is glue; compute runs in the kernel."""
    B, C, H, W = x_nchw.shape
    assert C == 1
    del embedding_dim  # derivable from params

    theta_x, theta_y, w1, b1, w2, b2 = params
    HW = H * W
    n_hidden = w1.shape[1]                    # 128
    n_out = w2.shape[1]                       # 10

    Hid_pad = _round_up(n_hidden, 128)        # 128
    N_pad = _round_up(n_out, 128)             # 10 -> 128 (lane-dense output)

    # --- parameter-only precompute (no per-sample compute hoisted) ---
    w_fused = _build_fused_weight(theta_x, theta_y, w1, img_h=H, img_w=W,
                                  hid_pad=Hid_pad).astype(jnp.bfloat16)
    b1_row = jnp.pad(b1.astype(jnp.float32), (0, Hid_pad - n_hidden)).reshape(1, Hid_pad)
    w2_pad = jnp.pad(w2.astype(jnp.float32),
                     ((0, Hid_pad - n_hidden), (0, N_pad - n_out)))
    b2_row = jnp.pad(b2.astype(jnp.float32), (0, N_pad - n_out)).reshape(1, N_pad)

    # --- activation stream: bf16, no K padding (block last dim == full array dim) ---
    # NOTE: in a real pipeline the caller would hand us bf16 directly; this cast is the
    # only wrapper-side touch of x.
    x_flat = x_nchw.reshape(B, HW).astype(jnp.bfloat16)
    B_pad = _round_up(B, 16)                  # 16-row alignment (bf16 sublane packing)
    if B_pad != B:
        x_flat = jnp.pad(x_flat, ((0, B_pad - B), (0, 0)))

    TB = min(block_batch, B_pad)
    # Keep >= 2 grid steps when the batch allows it so the "parallel" batch axis shards
    # across v7x's two TensorCores (harmless on single-TC v5e/v6e).
    if B_pad // TB < 2 and B_pad >= 32:
        TB = _round_up(pl.cdiv(B_pad, 2), 16)
    grid = (pl.cdiv(B_pad, TB),)              # partial last block OK: rows are independent

    flops = 2 * B_pad * (HW * Hid_pad + Hid_pad * N_pad)
    bytes_accessed = (B_pad * HW * 2 + B_pad * N_pad * 4            # x in, out
                      + HW * Hid_pad * 2 + Hid_pad * 4              # W_fused, b1
                      + Hid_pad * N_pad * 4 + N_pad * 4)            # w2, b2

    out = pl.pallas_call(
        _comp_classifier_kernel,
        out_shape=jax.ShapeDtypeStruct((B_pad, N_pad), jnp.float32),
        grid_spec=pltpu.PrefetchScalarGridSpec(
            num_scalar_prefetch=0,
            grid=grid,
            in_specs=[
                pl.BlockSpec((TB, HW), lambda i: (i, 0)),           # x tile (pipelined)
                pl.BlockSpec((HW, Hid_pad), lambda i: (0, 0)),      # fused weight (resident)
                pl.BlockSpec((1, Hid_pad), lambda i: (0, 0)),       # b1
                pl.BlockSpec((Hid_pad, N_pad), lambda i: (0, 0)),   # w2
                pl.BlockSpec((1, N_pad), lambda i: (0, 0)),         # b2
            ],
            out_specs=pl.BlockSpec((TB, N_pad), lambda i: (i, 0)),
        ),
        compiler_params=pltpu.CompilerParams(
            dimension_semantics=("parallel",)),
        cost_estimate=pl.CostEstimate(flops=flops, transcendentals=0,
                                      bytes_accessed=bytes_accessed),
    )(x_flat, w_fused, b1_row, w2_pad, b2_row)

    return out[:B, :n_out]


def emulation_reference(x_nchw, params):
    """Pure-JAX replica of the *kernel's numerics* (fused weight, bf16 streamed operands,
    f32 accumulation).  Differences vs the kernel are accumulation-order only."""
    theta_x, theta_y, w1, b1, w2, b2 = params
    B, _, H, W = x_nchw.shape
    HW = H * W
    wf = _build_fused_weight(theta_x, theta_y, w1, img_h=H, img_w=W,
                             hid_pad=w1.shape[1])
    wf = wf.astype(jnp.bfloat16).astype(jnp.float32)
    xb = x_nchw.reshape(B, HW).astype(jnp.bfloat16).astype(jnp.float32)
    h = jnp.maximum(xb @ wf + b1.astype(jnp.float32), 0.0)
    return h @ w2.astype(jnp.float32) + b2.astype(jnp.float32)


def reference_forward(x_nchw, params, *, embedding_dim):
    """Pure-JAX f32 reference replicating the PyTorch semantics exactly (for checking)."""
    theta_x, theta_y, w1, b1, w2, b2 = params
    B, _, H, W = x_nchw.shape

    ii, jj = jnp.meshgrid(jnp.arange(H), jnp.arange(W), indexing="ij")
    i_g = ii.reshape(-1).astype(jnp.float32)
    j_g = jj.reshape(-1).astype(jnp.float32)
    theta = i_g[:, None] * theta_x[None, :] + j_g[:, None] * theta_y[None, :]
    cos_t, sin_t = jnp.cos(theta), jnp.sin(theta)

    xf = x_nchw.reshape(B, H * W)
    x_rot = xf[:, :, None] * cos_t[None]          # (B, HW, D2)
    y_rot = -xf[:, :, None] * sin_t[None]
    v = jnp.stack([x_rot, y_rot], axis=-1).sum(axis=1).reshape(B, embedding_dim)

    h = jnp.maximum(v @ w1 + b1, 0.0)
    return h @ w2 + b2


def init_params(key, embedding_dim, img_w=28):
    D = embedding_dim
    D2 = D // 2
    # CompositionLayer parameter init (matches torch.range(1, D2) == [1..D2]).
    theta_x = 2.0 * math.pi * jnp.arange(1, D2 + 1, dtype=jnp.float32) / img_w
    theta_y = 2.0 * math.pi * jnp.arange(1, D2 + 1, dtype=jnp.float32) / img_w

    k1, k2, k3, k4 = jax.random.split(key, 4)
    bound1 = 1.0 / math.sqrt(D)
    w1 = jax.random.uniform(k1, (D, 128), jnp.float32, -bound1, bound1)   # (in, out)
    b1 = jax.random.uniform(k2, (128,), jnp.float32, -bound1, bound1)
    bound2 = 1.0 / math.sqrt(128)
    w2 = jax.random.uniform(k3, (128, 10), jnp.float32, -bound2, bound2)
    b2 = jax.random.uniform(k4, (10,), jnp.float32, -bound2, bound2)
    return (theta_x, theta_y, w1, b1, w2, b2)


if __name__ == "__main__":
    EMBEDDING_DIM = 32         # D2 = 16
    B, C, H, W = 2, 1, 28, 28  # CompositionLayer hard-codes 28x28, 1 channel

    key = jax.random.PRNGKey(0)
    k_x, k_p = jax.random.split(key)
    x = jax.random.uniform(k_x, (B, C, H, W), jnp.float32)
    params = init_params(k_p, EMBEDDING_DIM, img_w=W)

    out = composition_classifier_forward(x, params, embedding_dim=EMBEDDING_DIM)
    out = jax.block_until_ready(out)
    assert out.shape == (B, 10)

    # Structural check: identical numerics to the kernel path (fused weight + bf16 streamed
    # operands, f32 accumulation); only accumulation-order noise remains.
    emu = emulation_reference(x, params)
    assert jnp.allclose(out, emu, rtol=2e-3, atol=2e-3), (out, emu)

    # Semantic check vs exact f32 PyTorch-style reference.  Looser tolerance covers the
    # bf16 cast of the streamed operands and the re-associated (fused) contraction;
    # structural bugs produce O(1) errors.
    ref = reference_forward(x, params, embedding_dim=EMBEDDING_DIM)
    assert jnp.allclose(out, ref, rtol=5e-2, atol=5e-2), (out, ref)

    print("KERNEL_OK")
</pallas_src>

<mosaic_0001>
module attributes {stable_mosaic.version = 11 : i64} {
  func.func @_comp_classifier_kernel(%arg0: i32, %arg1: memref<16x784xbf16, #tpu.memory_space<vmem>>, %arg2: memref<784x128xbf16, #tpu.memory_space<vmem>>, %arg3: memref<1x128xf32, #tpu.memory_space<vmem>>, %arg4: memref<128x128xf32, #tpu.memory_space<vmem>>, %arg5: memref<1x128xf32, #tpu.memory_space<vmem>>, %arg6: memref<16x128xf32, #tpu.memory_space<vmem>>) attributes {dimension_semantics = [#tpu.dimension_semantics<parallel>], iteration_bounds = array<i64: 1>, scalar_prefetch = 0 : i64, scratch_operands = 0 : i64, tpu.core_type = #tpu.core_type<tc>, window_params = [{transform_indices = @transform_0, window_bounds = array<i64: 16, 784>}, {pipeline_mode = #tpu.pipeline_mode<synchronous>, transform_indices = @transform_1, window_bounds = array<i64: 784, 128>}, {pipeline_mode = #tpu.pipeline_mode<synchronous>, transform_indices = @transform_2, window_bounds = array<i64: 1, 128>}, {pipeline_mode = #tpu.pipeline_mode<synchronous>, transform_indices = @transform_3, window_bounds = array<i64: 128, 128>}, {pipeline_mode = #tpu.pipeline_mode<synchronous>, transform_indices = @transform_4, window_bounds = array<i64: 1, 128>}, {transform_indices = @transform_5, window_bounds = array<i64: 16, 128>}]} {
    %c0 = arith.constant 0 : index
    %c0_0 = arith.constant 0 : index
    %0 = vector.load %arg1[%c0, %c0_0] : memref<16x784xbf16, #tpu.memory_space<vmem>>, vector<16x784xbf16>
    %c0_1 = arith.constant 0 : index
    %c0_2 = arith.constant 0 : index
    %1 = vector.load %arg2[%c0_1, %c0_2] : memref<784x128xbf16, #tpu.memory_space<vmem>>, vector<784x128xbf16>
    %cst = arith.constant dense<0.000000e+00> : vector<16x128xf32>
    %2 = tpu.matmul %0, %1, %cst {dimension_numbers = #tpu.dot_dimension_numbers<[1], [0], [0], [1], [0, 0, 1, 1], [], []>} : vector<16x784xbf16>, vector<784x128xbf16>, vector<16x128xf32> -> vector<16x128xf32>
    %c0_3 = arith.constant 0 : index
    %c0_4 = arith.constant 0 : index
    %3 = vector.load %arg3[%c0_3, %c0_4] : memref<1x128xf32, #tpu.memory_space<vmem>>, vector<1x128xf32>
    %4 = vector.broadcast %3 : vector<1x128xf32> to vector<16x128xf32>
    %5 = arith.addf %2, %4 : vector<16x128xf32>
    %cst_5 = arith.constant 0.000000e+00 : f32
    %6 = vector.broadcast %cst_5 : f32 to vector<16x128xf32>
    %7 = arith.maximumf %5, %6 : vector<16x128xf32>
    %c0_6 = arith.constant 0 : index
    %c0_7 = arith.constant 0 : index
    %8 = vector.load %arg4[%c0_6, %c0_7] : memref<128x128xf32, #tpu.memory_space<vmem>>, vector<128x128xf32>
    %cst_8 = arith.constant dense<0.000000e+00> : vector<16x128xf32>
    %9 = tpu.matmul %7, %8, %cst_8 {dimension_numbers = #tpu.dot_dimension_numbers<[1], [0], [0], [1], [0, 0, 1, 1], [], []>} : vector<16x128xf32>, vector<128x128xf32>, vector<16x128xf32> -> vector<16x128xf32>
    %c0_9 = arith.constant 0 : index
    %c0_10 = arith.constant 0 : index
    %10 = vector.load %arg5[%c0_9, %c0_10] : memref<1x128xf32, #tpu.memory_space<vmem>>, vector<1x128xf32>
    %11 = vector.broadcast %10 : vector<1x128xf32> to vector<16x128xf32>
    %12 = arith.addf %9, %11 : vector<16x128xf32>
    %c0_11 = arith.constant 0 : index
    %c0_12 = arith.constant 0 : index
    %13 = vector.load %arg6[%c0_11, %c0_12] : memref<16x128xf32, #tpu.memory_space<vmem>>, vector<16x128xf32>
    tpu.vector_store %arg6[%c0_11, %c0_12], %12 {strides = array<i32>} : memref<16x128xf32, #tpu.memory_space<vmem>>, vector<16x128xf32>,
    return
  }
  func.func @transform_0(%arg0: i32) -> (i32, i32) {
    %c0_i32 = arith.constant 0 : i32
    %c0_i32_0 = arith.constant 0 : i32
    return %arg0, %c0_i32 : i32, i32
  }
  func.func @transform_1(%arg0: i32) -> (i32, i32) {
    %c0_i32 = arith.constant 0 : i32
    %c0_i32_0 = arith.constant 0 : i32
    %c0_i32_1 = arith.constant 0 : i32
    return %c0_i32, %c0_i32_0 : i32, i32
  }
  func.func @transform_2(%arg0: i32) -> (i32, i32) {
    %c0_i32 = arith.constant 0 : i32
    %c0_i32_0 = arith.constant 0 : i32
    %c0_i32_1 = arith.constant 0 : i32
    return %c0_i32, %c0_i32_0 : i32, i32
  }
  func.func @transform_3(%arg0: i32) -> (i32, i32) {
    %c0_i32 = arith.constant 0 : i32
    %c0_i32_0 = arith.constant 0 : i32
    %c0_i32_1 = arith.constant 0 : i32
    return %c0_i32, %c0_i32_0 : i32, i32
  }
  func.func @transform_4(%arg0: i32) -> (i32, i32) {
    %c0_i32 = arith.constant 0 : i32
    %c0_i32_0 = arith.constant 0 : i32
    %c0_i32_1 = arith.constant 0 : i32
    return %c0_i32, %c0_i32_0 : i32, i32
  }
  func.func @transform_5(%arg0: i32) -> (i32, i32) {
    %c0_i32 = arith.constant 0 : i32
    %c0_i32_0 = arith.constant 0 : i32
    return %arg0, %c0_i32 : i32, i32
  }
}

</mosaic_0001>

<bundles_post_ra>
// kernel: tpu_custom_call.1
= control target key start
LH: loop header
LB: loop body
LE: loop exit
PB: predicated region body
PF: predicated region fallthrough
CT: control target
= control target key end

     0   :  { %10 = vsyncpa [#allocation3], 0  ;;  %s1136_s0 = inlined_call_operand.hbm [shape: bf16[16,784], index: 0, kind: input, shape index: {}]   ;;  %s1137_s1 = inlined_call_operand.hbm [shape: bf16[784,128], index: 1, kind: input, shape index: {}]   ;;  %s1138_s2 = inlined_call_operand.vmem [shape: f32[1,128], index: 2, kind: input, shape index: {}]   ;;  %s1139_s3 = inlined_call_operand.hbm [shape: f32[128,128], index: 3, kind: input, shape index: {}]   ;;  %s1140_s4 = inlined_call_operand.vmem [shape: f32[1,128], index: 4, kind: input, shape index: {}]   ;;  %s1141_s5 = inlined_call_operand.hbm [shape: f32[16,128], index: 5, kind: output, shape index: {}]  }
   0x1   :  { %11 = vsyncpa [#allocation6], 0  ;;  %s30_s20 = sshll.u32 %s1137_s1, 4  ;;  %s31_s20 = int_to_ptr.hbm [resolvable:$true] %s30_s20 }
   0x2   :  { %12 = vsyncpa [#allocation4], 0  ;;  %s1072_s21 = smov [#allocation5]   ;;  %s17_s25 = sshll.u32 %s1136_s0, 4  ;;  %s18_s25 = int_to_ptr.hbm [resolvable:$true] %s17_s25 }
   0x3   :  { %s32_s22 = sshll.u32 %s1072_s21, 4  ;;  %s1073_s26 = smov 64   ;;  %s33_s22 = int_to_ptr.vmem [resolvable:$true] %s32_s22 }
   0x4   :  { %s1074_s27 = smov 4   ;;  %s1075_s28 = smov [#allocation2]  }
   0x5   :  { %38 = dma.hbm_to_vmem [thread:$0]  %s31_s20, 6272, %s33_s22, [#allocation6], %s1073_s26, %s1073_s26, %s1074_s27  }
   0x6   :  { %s19_s29 = sshll.u32 %s1075_s28, 4  ;;  %s1076_s30 = smov 448   ;;  %s20_s29 = int_to_ptr.vmem [resolvable:$true] %s19_s29 }
   0x7   :  { %s1077_s6 = smov 28   ;;  %s45_s8 = sshll.u32 %s1139_s3, 4  ;;  %s46_s8 = int_to_ptr.hbm [resolvable:$true] %s45_s8 }
   0x8   :  { %25 = dma.hbm_to_vmem [thread:$0]  %s18_s25, 896, %s20_s29, [#allocation3], %s1076_s30, %s1076_s30, %s1077_s6  }
   0x9   :  { %s1078_s9 = smov [#allocation7]   ;;  %s1079_s11 = smov 128  }
   0xa   :  { %s47_s10 = sshll.u32 %s1078_s9, 4  ;;  %s1080_s0 = smov 8   ;;  %s48_s10 = int_to_ptr.vmem [resolvable:$true] %s47_s10 }
   0xb   :  { %53 = dma.hbm_to_vmem [thread:$0]  %s46_s8, 2048, %s48_s10, [#allocation6], %s1079_s11, %s1079_s11, %s1080_s0  }
   0xc   :  { %1066 = dma.done.wait [#allocation3], 896  }
   0xd   :  { %1067 = vsyncadd [#allocation3], 4294966400 }
   0xe   :  { %1068 = dma.done.wait [#allocation6], 8320  }
   0xf   :  { %1069 = vsyncadd [#allocation6], 4294958976  ;;  %v916_v0 = vld [vmem:[#allocation5 + $0x38] sm:$0xff]  ;;  %v915_v4 = vld [vmem:[#allocation5 + $0x30] sm:$0xff]  ;;  %vm508_vm0 = vcmask 130048   ;;  %s1081_s14 = smov [#allocation8]  }
  0x10   :  { %v924_v1 = vld [vmem:[#allocation5 + $0x78] sm:$0xff]  ;;  %512 = vmatpush.bf16.msra.mxu0 %v916_v0  ;;  %v923_v5 = vld [vmem:[#allocation5 + $0x70] sm:$0xff]  ;;  %v914_v8 = vld [vmem:[#allocation5 + $0x28] sm:$0xff]  ;;  %s661_s15 = sshll.u32 %s1081_s14, 4  ;;  %s663_s18 = sshll.u32 %s1141_s5, 4  ;;  %s662_s15 = int_to_ptr.vmem [resolvable:$true] %s661_s15  ;;  %s664_s18 = int_to_ptr.hbm [resolvable:$true] %s663_s18 }
  0x11   :  { %v932_v2 = vld [vmem:[#allocation5 + $0xb8] sm:$0xff]  ;;  %526 = vmatpush.bf16.msra.mxu1 %v924_v1  ;;  %v931_v6 = vld [vmem:[#allocation5 + $0xb0] sm:$0xff]  ;;  %v922_v9 = vld [vmem:[#allocation5 + $0x68] sm:$0xff] }
  0x12   :  { %v940_v3 = vld [vmem:[#allocation5 + $0xf8] sm:$0xff]  ;;  %540 = vmatpush.bf16.msra.mxu2 %v932_v2  ;;  %v939_v7 = vld [vmem:[#allocation5 + $0xf0] sm:$0xff]  ;;  %v930_v10 = vld [vmem:[#allocation5 + $0xa8] sm:$0xff] }
  0x13   :  { %554 = vmatpush.bf16.msra.mxu3 %v940_v3  ;;  %v938_v11 = vld [vmem:[#allocation5 + $0xe8] sm:$0xff]  ;;  %v913_v12 = vld [vmem:[#allocation5 + $0x20] sm:$0xff]  ;;  %v912_v16 = vld [vmem:[#allocation5 + $0x18] sm:$0xff] }
  0x14   :  { %513 = vmatpush.bf16.msra.mxu0 %v915_v4  ;;  %v921_v13 = vld [vmem:[#allocation5 + $0x60] sm:$0xff]  ;;  %v920_v17 = vld [vmem:[#allocation5 + $0x58] sm:$0xff]  ;;  %v911_v20 = vld [vmem:[#allocation5 + $0x10] sm:$0xff] }
  0x15   :  { %527 = vmatpush.bf16.msra.mxu1 %v923_v5  ;;  %v929_v14 = vld [vmem:[#allocation5 + $0xa0] sm:$0xff]  ;;  %v928_v18 = vld [vmem:[#allocation5 + $0x98] sm:$0xff]  ;;  %v919_v21 = vld [vmem:[#allocation5 + $0x50] sm:$0xff] }
  0x16   :  { %541 = vmatpush.bf16.msra.mxu2 %v931_v6  ;;  %v937_v15 = vld [vmem:[#allocation5 + $0xe0] sm:$0xff]  ;;  %v936_v19 = vld [vmem:[#allocation5 + $0xd8] sm:$0xff]  ;;  %v927_v22 = vld [vmem:[#allocation5 + $0x90] sm:$0xff] }
  0x17   :  { %555 = vmatpush.bf16.msra.mxu3 %v939_v7  ;;  %v935_v23 = vld [vmem:[#allocation5 + $0xd0] sm:$0xff]  ;;  %v910_v24 = vld [vmem:[#allocation5 + $0x8] sm:$0xff]  ;;  %v909_v28 = vld [vmem:[#allocation5] sm:$0xff] }
  0x18   :  { %514 = vmatpush.bf16.msra.mxu0 %v914_v8  ;;  %v918_v25 = vld [vmem:[#allocation5 + $0x48] sm:$0xff]  ;;  %v917_v29 = vld [vmem:[#allocation5 + $0x40] sm:$0xff]  ;;  %v948_v34 = vld [vmem:[#allocation5 + $0x138] sm:$0xff] }
  0x19   :  { %528 = vmatpush.bf16.msra.mxu1 %v922_v9  ;;  %v926_v26 = vld [vmem:[#allocation5 + $0x88] sm:$0xff]  ;;  %v905_v31 = vld [vmem:[#allocation2 + $0x18] sm:$0xf0]  ;;  %v956_v35 = vld [vmem:[#allocation5 + $0x178] sm:$0xff] }
  0x1a   :  { %542 = vmatpush.bf16.msra.mxu2 %v930_v10  ;;  %v934_v27 = vld [vmem:[#allocation5 + $0xc8] sm:$0xff]  ;;  %v925_v36 = vld [vmem:[#allocation5 + $0x80] sm:$0xff]  ;;  %v687_v38 = vld [vmem:[#allocation2 + $0x8] sm:$0xf] }
  0x1b   :  { %556 = vmatpush.bf16.msra.mxu3 %v938_v11  ;;  %v679_v30 = vld [vmem:[#allocation2] sm:$0xf]  ;;  %v902_v32 = vld [vmem:[#allocation2 + $0x4] sm:$0xf]  ;;  %v933_v37 = vld [vmem:[#allocation5 + $0xc0] sm:$0xff] }
  0x1c   :  { %515 = vmatpush.bf16.msra.mxu0 %v913_v12  ;;  %v681_v33 = vld [vmem:[#allocation2 + $0x1c] sm:$0xf0]  ;;  %v906_v39 = vld [vmem:[#allocation2 + $0x20] sm:$0xf0]  ;;  %v680_v40 = vor.u32 %v905_v31, %v679_v30  ;;  %v903_v41 = vld [vmem:[#allocation2 + $0xc] sm:$0xf] }
  0x1d   :  { %529 = vmatpush.bf16.msra.mxu1 %v921_v13  ;;  %v689_v42 = vld [vmem:[#allocation2 + $0x24] sm:$0xf0]  ;;  %v684_v43 = vor.u32 %v902_v32, %v681_v33  ;;  %v957_v44 = vld [vmem:[#allocation5 + $0x180] sm:$0xff]  ;;  %v688_v47 = vor.u32 %v906_v39, %v687_v38  ;;  %v946_v49 = vld [vmem:[#allocation5 + $0x128] sm:$0xff] }
  0x1e   :  { %543 = vmatpush.bf16.msra.mxu2 %v929_v14  ;;  %v947_v45 = vld [vmem:[#allocation5 + $0x130] sm:$0xff]  ;;  %v692_v48 = vor.u32 %v903_v41, %v689_v42  ;;  %v954_v50 = vld [vmem:[#allocation5 + $0x168] sm:$0xff]  ;;  %v945_v51 = vld [vmem:[#allocation5 + $0x120] sm:$0xff] }
  0x1f   :  { %557 = vmatpush.bf16.msra.mxu3 %v937_v15  ;;  %v955_v46 = vld [vmem:[#allocation5 + $0x170] sm:$0xff]  ;;  %v953_v52 = vld [vmem:[#allocation5 + $0x160] sm:$0xff]  ;;  %v944_v53 = vld [vmem:[#allocation5 + $0x118] sm:$0xff] }
  0x20   :  { %516 = vmatpush.bf16.msra.mxu0 %v912_v16  ;;  %v952_v54 = vld [vmem:[#allocation5 + $0x158] sm:$0xff]  ;;  %v703_v55 = vld [vmem:[#allocation2 + $0x18] sm:$0xf]  ;;  %v943_v57 = vld [vmem:[#allocation5 + $0x110] sm:$0xff] }
  0x21   :  { %530 = vmatpush.bf16.msra.mxu1 %v920_v17  ;;  %v908_v56 = vld [vmem:[#allocation2 + $0x30] sm:$0xf0]  ;;  %v951_v58 = vld [vmem:[#allocation5 + $0x150] sm:$0xff]  ;;  %v942_v60 = vld [vmem:[#allocation5 + $0x108] sm:$0xff] }
  0x22   :  { %544 = vmatpush.bf16.msra.mxu2 %v928_v18  ;;  %v704_v59 = vor.u32 %v908_v56, %v703_v55  ;;  %v950_v61 = vld [vmem:[#allocation5 + $0x148] sm:$0xff]  ;;  %v941_v62 = vld [vmem:[#allocation5 + $0x100] sm:$0xff]  ;;  %v695_v0 = vld [vmem:[#allocation2 + $0x10] sm:$0xf] }
  0x23   :  { %558 = vmatpush.bf16.msra.mxu3 %v936_v19  ;;  %v949_v63 = vld [vmem:[#allocation5 + $0x140] sm:$0xff]  ;;  %v907_v1 = vld [vmem:[#allocation2 + $0x28] sm:$0xf0]  ;;  %v904_v2 = vld [vmem:[#allocation2 + $0x14] sm:$0xf] }
  0x24   :  { %517 = vmatpush.bf16.msra.mxu0 %v911_v20  ;;  %v697_v3 = vld [vmem:[#allocation2 + $0x2c] sm:$0xf0]  ;;  %v696_v4 = vor.u32 %v907_v1, %v695_v0  ;;  %v627_v6 = vld [vmem:[#allocation7 + $0x78] sm:$0xff]  ;;  %v625_v8 = vld [vmem:[#allocation7 + $0x68] sm:$0xff] }
  0x25   :  { %531 = vmatpush.bf16.msra.mxu1 %v919_v21  ;;  %v700_v5 = vor.u32 %v904_v2, %v697_v3  ;;  %v626_v7 = vld [vmem:[#allocation7 + $0x70] sm:$0xff]  ;;  %v624_v9 = vld [vmem:[#allocation7 + $0x60] sm:$0xff]  ;;  %v623_v10 = vld [vmem:[#allocation7 + $0x58] sm:$0xff] }
  0x26   :  { %545 = vmatpush.bf16.msra.mxu2 %v927_v22  ;;  %v622_v11 = vld [vmem:[#allocation7 + $0x50] sm:$0xff]  ;;  %v621_v12 = vld [vmem:[#allocation7 + $0x48] sm:$0xff]  ;;  %v620_v13 = vld [vmem:[#allocation7 + $0x40] sm:$0xff] }
  0x27   :  { %559 = vmatpush.bf16.msra.mxu3 %v935_v23  ;;  %v619_v14 = vld [vmem:[#allocation7 + $0x38] sm:$0xff]  ;;  %v618_v15 = vld [vmem:[#allocation7 + $0x30] sm:$0xff]  ;;  %v617_v16 = vld [vmem:[#allocation7 + $0x28] sm:$0xff] }
  0x28   :  { %518 = vmatpush.bf16.msra.mxu0 %v910_v24  ;;  %v616_v17 = vld [vmem:[#allocation7 + $0x20] sm:$0xff]  ;;  %v615_v18 = vld [vmem:[#allocation7 + $0x18] sm:$0xff]  ;;  %v614_v19 = vld [vmem:[#allocation7 + $0x10] sm:$0xff] }
  0x29   :  { %532 = vmatpush.bf16.msra.mxu1 %v918_v25  ;;  %v613_v20 = vld [vmem:[#allocation7 + $0x8] sm:$0xff]  ;;  %v612_v21 = vld [vmem:[#allocation7] sm:$0xff] }
  0x2a   :  { %546 = vmatpush.bf16.msra.mxu2 %v926_v26  ;;  %v968_v25 = vld [vmem:[%s1138_s2] ss:$0 sm:$0xff] }
  0x2b   :  { %560 = vmatpush.bf16.msra.mxu3 %v934_v27 }
  0x2c   :  { %519 = vmatpush.bf16.msra.mxu0 %v909_v28 }
  0x2d   :  { %533 = vmatpush.bf16.msra.mxu1 %v917_v29 }
  0x2e   :  { %547 = vmatpush.bf16.msra.mxu2 %v925_v36 }
  0x2f   :  { %561 = vmatpush.bf16.msra.mxu3 %v933_v37  ;;  %520 = vmatmul.bf16.vlgmr.msra.gmra.mxu0 %v680_v40 }
  0x30   :  { %568 = vmatpush.bf16.msrb.mxu0 %v948_v34  ;;  %534 = vmatmul.bf16.vlgmr.msra.gmra.mxu1 %v684_v43 }
  0x31   :  { %582 = vmatpush.bf16.msrb.mxu1 %v956_v35  ;;  %548 = vmatmul.bf16.vlgmr.msra.gmra.mxu2 %v688_v47 }
  0x32   :  { %603 = vmatpush.bf16.msrb.mxu2 %v957_v44  ;;  %562 = vmatmul.bf16.vlgmr.msra.gmra.mxu3 %v692_v48 }
  0x33   :  { %632 = vmatpush.msrb.mxu3 %v627_v6 }
  0x34   :  { %569 = vmatpush.bf16.msrb.mxu0 %v947_v45 }
  0x35   :  { %583 = vmatpush.bf16.msrb.mxu1 %v955_v46  ;;  %633 = vmatpush.msrb.mxu3 %v626_v7 }
  0x37   :  { %634 = vmatpush.msrb.mxu3 %v625_v8 }
  0x38   :  { %570 = vmatpush.bf16.msrb.mxu0 %v946_v49 }
  0x39   :  { %584 = vmatpush.bf16.msrb.mxu1 %v954_v50  ;;  %635 = vmatpush.msrb.mxu3 %v624_v9 }
  0x3b   :  { %636 = vmatpush.msrb.mxu3 %v623_v10 }
  0x3c   :  { %571 = vmatpush.bf16.msrb.mxu0 %v945_v51 }
  0x3d   :  { %585 = vmatpush.bf16.msrb.mxu1 %v953_v52  ;;  %637 = vmatpush.msrb.mxu3 %v622_v11 }
  0x3f   :  { %638 = vmatpush.msrb.mxu3 %v621_v12 }
  0x40   :  { %572 = vmatpush.bf16.msrb.mxu0 %v944_v53  ;;  %v969_v53 = vld [vmem:[%s1140_s4] ss:$0 sm:$0xff] }
  0x41   :  { %586 = vmatpush.bf16.msrb.mxu1 %v952_v54  ;;  %901 = vmatmul.msk.bf16.vlgmr.msrb.gmra.mxu2 %vm508_vm0, %v704_v59 }
  0x42   :  { %639 = vmatpush.msrb.mxu3 %v620_v13 }
  0x44   :  { %573 = vmatpush.bf16.msrb.mxu0 %v943_v57  ;;  %640 = vmatpush.msrb.mxu3 %v619_v14 }
  0x45   :  { %587 = vmatpush.bf16.msrb.mxu1 %v951_v58 }
  0x46   :  { %641 = vmatpush.msrb.mxu3 %v618_v15 }
  0x48   :  { %574 = vmatpush.bf16.msrb.mxu0 %v942_v60  ;;  %642 = vmatpush.msrb.mxu3 %v617_v16 }
  0x49   :  { %588 = vmatpush.bf16.msrb.mxu1 %v950_v61 }
  0x4a   :  { %643 = vmatpush.msrb.mxu3 %v616_v17 }
  0x4c   :  { %575 = vmatpush.bf16.msrb.mxu0 %v941_v62  ;;  %644 = vmatpush.msrb.mxu3 %v615_v18 }
  0x4d   :  { %589 = vmatpush.bf16.msrb.mxu1 %v949_v63 }
  0x4e   :  { %645 = vmatpush.msrb.mxu3 %v614_v19 }
  0x4f   :  { %576 = vmatmul.bf16.vlgmr.msrb.gmra.mxu0 %v696_v4 }
  0x50   :  { %590 = vmatmul.bf16.vlgmr.msrb.gmra.mxu1 %v700_v5  ;;  %646 = vmatpush.msrb.mxu3 %v613_v20 }
  0x52   :  { %647 = vmatpush.msrb.mxu3 %v612_v21 }
  0xac   :  { %v521_v22 = vpop.f32.mrf.mxu0 }
  0xad   :  { %v535_v23 = vpop.f32.mrf.mxu1  ;;  %v522_v26 = vadd.f32 %v968_v25, %v521_v22 }
  0xaf   :  { %v536_v27 = vadd.f32 %v535_v23, %v522_v26 }
  0xb4   :  { %v549_v24 = vpop.f32.mrf.mxu2  ;;  %v523_v28 = vpop.f32.mrf.mxu0 }
  0xb5   :  { %v537_v29 = vpop.f32.mrf.mxu1  ;;  %v563_v31 = vpop.f32.mrf.mxu3  ;;  %v550_v32 = vadd.f32 %v549_v24, %v536_v27  ;;  %v524_v33 = vadd.f32 %v968_v25, %v523_v28 }
  0xb7   :  { %v564_v34 = vadd.f32 %v563_v31, %v550_v32  ;;  %v538_v35 = vadd.f32 %v537_v29, %v524_v33 }
  0xbc   :  { %v551_v30 = vpop.f32.mrf.mxu2 }
  0xbd   :  { %v552_v40 = vadd.f32 %v551_v30, %v538_v35  ;;  %v565_v42 = vpop.f32.mrf.mxu3 }
  0xbf   :  { %v566_v44 = vadd.f32 %v565_v42, %v552_v40 }
  0xc4   :  { %v605_v39 = vpop.f32.mrf.mxu2 }
  0xcc   :  { %v577_v36 = vpop.f32.mrf.mxu0  ;;  %v607_v50 = vpop.f32.mrf.mxu2 }
  0xcd   :  { %v591_v37 = vpop.f32.mrf.mxu1  ;;  %v578_v38 = vadd.f32 %v577_v36, %v564_v34 }
  0xcf   :  { %v592_v41 = vadd.f32 %v591_v37, %v578_v38 }
  0xd1   :  { %v606_v43 = vadd.f32 %v605_v39, %v592_v41 }
  0xd3   :  { %v610_v45 = vmax.f32 %v606_v43, 0.0 }
  0xd4   :  { %v579_v46 = vpop.f32.mrf.mxu0 }
  0xd5   :  { %v580_v47 = vadd.f32 %v579_v46, %v566_v44  ;;  %648 = vmatmul.f32.vlgmr.msrb.gmra.mxu3 %v610_v45  ;;  %v593_v48 = vpop.f32.mrf.mxu1 }
  0xd7   :  { %v594_v49 = vadd.f32 %v593_v48, %v580_v47 }
  0xd9   :  { %v608_v51 = vadd.f32 %v607_v50, %v594_v49 }
  0xdb   :  { %v611_v52 = vmax.f32 %v608_v51, 0.0 }
  0xdd   :  { %651 = vmatmul.f32.gmra.mxu3 %v611_v52 }
 0x158   :  { %v649_v54 = vpop.f32.mrf.mxu3 }
 0x159   :  { %v650_v55 = vadd.f32 %v969_v53, %v649_v54 }
 0x15b   :  { %655 = vst [vmem:[#allocation8] sm:$0xff] %v650_v55 }
 0x160   :  { %v652_v56 = vpop.f32.mrf.mxu3 }
 0x161   :  { %v653_v57 = vadd.f32 %v969_v53, %v652_v56 }
 0x163   :  { %656 = vst [vmem:[#allocation8 + $0x8] sm:$0xff] %v653_v57 }
 0x164   :  { %669 = dma.vmem_to_hbm [thread:$0]  %s662_s15, 256, %s664_s18, [#allocation4], %s1079_s11, %s1079_s11, %s1080_s0  }
 0x165   :  { %1070 = dma.done.wait [#allocation4], 256  }
 0x166   :  { %1071 = vsyncadd [#allocation4], 4294967040 }
 0x167   :  { %674 = vsyncpa [#allocation3], 1 }
 0x168   :  { %675 = vsyncpa [#allocation6], 1 }
 0x169   :  { %676 = vsyncpa [#allocation4], 1 }

</bundles_post_ra>
